<compile_context>
chip_gen: v6e
topology: v6e:2x2x1
jax: 0.10.0
libtpu: 0.0.40
codegen_flags: <defaults>
</compile_context>

<pallas_src>
import functools

import jax
import jax.numpy as jnp
from jax.experimental import pallas as pl
from jax.experimental.pallas import tpu as pltpu


def _round_up(a, b):
    return (a + b - 1) // b * b


def base_forward_kernel(x_ref, ws_ref, bs_ref, w1_ref, b1_ref, w2_ref, b2_ref,
                        out_ref, acc_ref):
    # grid = (batch tiles [parallel], spatial reduction steps [arbitrary])
    k = pl.program_id(1)

    @pl.when(k == 0)
    def _():
        acc_ref[...] = jnp.zeros_like(acc_ref)

    # Raw spatial partial sums (lane-axis reduction -> XLU).  The 1/(H*W)
    # mean scale is folded into w_stem in the wrapper, so plain sums suffice.
    acc_ref[...] += jnp.sum(x_ref[...], axis=-1)                 # [TB, C] f32

    @pl.when(k == pl.num_programs(1) - 1)
    def _():
        pooled = acc_ref[...]                                    # [TB, C] f32

        # ---- backbone stand-in stem: GAP (above) + linear projection ----
        feat = jnp.dot(pooled.astype(ws_ref.dtype), ws_ref[...],
                       preferred_element_type=jnp.float32) + bs_ref[...]

        # ---- head ('two_layer'): Linear -> Dropout(eval: id) -> ReLU -> Linear
        h = jnp.dot(feat.astype(w1_ref.dtype), w1_ref[...],
                    preferred_element_type=jnp.float32) + b1_ref[...]
        h = jnp.maximum(h, 0.0)
        out = jnp.dot(h.astype(w2_ref.dtype), w2_ref[...],
                      preferred_element_type=jnp.float32) + b2_ref[...]

        out_ref[...] = out.astype(out_ref.dtype)


def base_forward(x_nchw, params, *, ts_max=2048):
    """x_nchw: [B, C, H, W] float32. Returns logits [B, num_classes]."""
    B, C, H, W = x_nchw.shape
    HW = H * W
    w_stem, b_stem, w1, b1, w2, b2 = params
    NF = w_stem.shape[1]
    NH = w1.shape[1]
    num_classes = w2.shape[1]

    # ---- tile sizes (sized to stay well under v7x's 64 MiB VMEM) ----
    TB = min(128, _round_up(B, 8))                 # batch rows per grid step
    B_pad = _round_up(B, TB)
    TS = min(_round_up(ts_max, 128), _round_up(HW, 128))  # spatial lanes / step
    HW_pad = _round_up(HW, TS)

    # ---- wrapper-side layout / dtype plumbing (glue only) ----
    x3 = x_nchw.reshape(B, C, HW)
    if B_pad != B or HW_pad != HW:
        x3 = jnp.pad(x3, ((0, B_pad - B), (0, 0), (0, HW_pad - HW)))

    # fold 1/(H*W) into the stem weight; bf16 matmul operands, f32 biases.
    ws = (w_stem * (1.0 / float(HW))).astype(jnp.bfloat16)
    bs = b_stem.astype(jnp.float32)
    w1b = w1.astype(jnp.bfloat16)
    b1f = b1.astype(jnp.float32)

    # lane-dense output: pad num_classes up to a multiple of 128 (zeros).
    NC_pad = _round_up(num_classes, 128)
    w2p = jnp.pad(w2, ((0, 0), (0, NC_pad - num_classes))).astype(jnp.bfloat16)
    b2p = jnp.pad(b2, ((0, 0), (0, NC_pad - num_classes))).astype(jnp.float32)

    grid_spec = pltpu.PrefetchScalarGridSpec(
        num_scalar_prefetch=0,
        grid=(B_pad // TB, HW_pad // TS),
        in_specs=[
            # streamed input tiles
            pl.BlockSpec((TB, C, TS), lambda i, k: (i, 0, k)),
            # weights/biases: constant block index -> fetched once, resident
            pl.BlockSpec((C, NF), lambda i, k: (0, 0)),
            pl.BlockSpec((1, NF), lambda i, k: (0, 0)),
            pl.BlockSpec((NF, NH), lambda i, k: (0, 0)),
            pl.BlockSpec((1, NH), lambda i, k: (0, 0)),
            pl.BlockSpec((NH, NC_pad), lambda i, k: (0, 0)),
            pl.BlockSpec((1, NC_pad), lambda i, k: (0, 0)),
        ],
        out_specs=pl.BlockSpec((TB, NC_pad), lambda i, k: (i, 0)),
        scratch_shapes=[pltpu.VMEM((TB, C), jnp.float32)],
    )

    out_pad = pl.pallas_call(
        base_forward_kernel,
        out_shape=jax.ShapeDtypeStruct((B_pad, NC_pad), jnp.float32),
        grid_spec=grid_spec,
        compiler_params=pltpu.CompilerParams(
            dimension_semantics=("parallel", "arbitrary"),
            vmem_limit_bytes=32 * 1024 * 1024,
        ),
    )(x3, ws, bs, w1b, b1f, w2p, b2p)

    return out_pad[:B, :num_classes]


def base_forward_ref(x_nchw, params):
    """Pure-JAX reference (f32) for correctness checking."""
    B, C, H, W = x_nchw.shape
    w_stem, b_stem, w1, b1, w2, b2 = params
    pooled = jnp.mean(x_nchw.reshape(B, C, H * W), axis=-1)
    feat = pooled @ w_stem + b_stem
    h = jnp.maximum(feat @ w1 + b1, 0.0)
    return h @ w2 + b2


def init_params(key, in_channels, num_features, hidden, num_classes):
    k0, k1, k2 = jax.random.split(key, 3)
    # deterministic, small-scale init (synthetic weights, not a checkpoint)
    w_stem = jax.random.normal(k0, (in_channels, num_features), jnp.float32) * 0.05
    b_stem = jnp.zeros((1, num_features), jnp.float32)
    w1 = jax.random.normal(k1, (num_features, hidden), jnp.float32) * 0.02
    b1 = jnp.zeros((1, hidden), jnp.float32)
    w2 = jax.random.normal(k2, (hidden, num_classes), jnp.float32) * 0.02
    b2 = jnp.zeros((1, num_classes), jnp.float32)
    return (w_stem, b_stem, w1, b1, w2, b2)


if __name__ == "__main__":
    # small shapes consistent with the module's forward
    B, C, H, W = 2, 4, 16, 16
    NUM_FEATURES = 512        # backbone2nf['resnet18']
    HIDDEN = 512              # head_type == 'two_layer'
    NUM_CLASSES = 5

    key = jax.random.PRNGKey(0)
    kx, kp = jax.random.split(key)
    x = jax.random.normal(kx, (B, C, H, W), jnp.float32)
    params = init_params(kp, C, NUM_FEATURES, HIDDEN, NUM_CLASSES)

    # ts=128 forces a multi-step spatial reduction grid even at toy shapes.
    fwd = jax.jit(functools.partial(base_forward, ts_max=128))
    out = fwd(x, params)
    jax.block_until_ready(out)

    assert out.shape == (B, NUM_CLASSES)
    assert out.dtype == jnp.float32

    ref = base_forward_ref(x, params)
    assert bool(jnp.all(jnp.isfinite(out)))
    assert jnp.allclose(out, ref, rtol=5e-2, atol=1e-3), (out, ref)

    print("KERNEL_OK")
</pallas_src>

<mosaic_0001>
module attributes {stable_mosaic.version = 11 : i64} {
  func.func @base_forward_kernel(%arg0: i32, %arg1: i32, %arg2: memref<8x4x128xf32, #tpu.memory_space<vmem>>, %arg3: memref<4x512xbf16, #tpu.memory_space<vmem>>, %arg4: memref<1x512xf32, #tpu.memory_space<vmem>>, %arg5: memref<512x512xbf16, #tpu.memory_space<vmem>>, %arg6: memref<1x512xf32, #tpu.memory_space<vmem>>, %arg7: memref<512x128xbf16, #tpu.memory_space<vmem>>, %arg8: memref<1x128xf32, #tpu.memory_space<vmem>>, %arg9: memref<8x128xf32, #tpu.memory_space<vmem>>, %arg10: memref<8x4xf32, #tpu.memory_space<vmem>>) attributes {dimension_semantics = [#tpu.dimension_semantics<parallel>, #tpu.dimension_semantics<arbitrary>], iteration_bounds = array<i64: 1, 2>, scalar_prefetch = 0 : i64, scratch_operands = 1 : i64, tpu.core_type = #tpu.core_type<tc>, window_params = [{transform_indices = @transform_0, window_bounds = array<i64: 8, 4, 128>}, {pipeline_mode = #tpu.pipeline_mode<synchronous>, transform_indices = @transform_1, window_bounds = array<i64: 4, 512>}, {pipeline_mode = #tpu.pipeline_mode<synchronous>, transform_indices = @transform_2, window_bounds = array<i64: 1, 512>}, {pipeline_mode = #tpu.pipeline_mode<synchronous>, transform_indices = @transform_3, window_bounds = array<i64: 512, 512>}, {pipeline_mode = #tpu.pipeline_mode<synchronous>, transform_indices = @transform_4, window_bounds = array<i64: 1, 512>}, {pipeline_mode = #tpu.pipeline_mode<synchronous>, transform_indices = @transform_5, window_bounds = array<i64: 512, 128>}, {pipeline_mode = #tpu.pipeline_mode<synchronous>, transform_indices = @transform_6, window_bounds = array<i64: 1, 128>}, {transform_indices = @transform_7, window_bounds = array<i64: 8, 128>}]} {
    %c0_i32 = arith.constant 0 : i32
    %0 = arith.cmpi eq, %arg1, %c0_i32 : i32
    %1 = arith.extui %0 : i1 to i32
    %c0_i32_0 = arith.constant 0 : i32
    %2 = arith.cmpi ne, %1, %c0_i32_0 : i32
    scf.if %2 {
      %cst_8 = arith.constant 0.000000e+00 : f32
      %11 = vector.broadcast %cst_8 : f32 to vector<8x4xf32>
      %c0_9 = arith.constant 0 : index
      %c0_10 = arith.constant 0 : index
      %12 = vector.load %arg10[%c0_9, %c0_10] : memref<8x4xf32, #tpu.memory_space<vmem>>, vector<8x4xf32>
      tpu.vector_store %arg10[%c0_9, %c0_10], %11 {strides = array<i32>} : memref<8x4xf32, #tpu.memory_space<vmem>>, vector<8x4xf32>,
    } else {
    }
    %c0 = arith.constant 0 : index
    %c0_1 = arith.constant 0 : index
    %3 = vector.load %arg10[%c0, %c0_1] : memref<8x4xf32, #tpu.memory_space<vmem>>, vector<8x4xf32>
    %c0_2 = arith.constant 0 : index
    %c0_3 = arith.constant 0 : index
    %c0_4 = arith.constant 0 : index
    %4 = vector.load %arg2[%c0_2, %c0_3, %c0_4] : memref<8x4x128xf32, #tpu.memory_space<vmem>>, vector<8x4x128xf32>
    %cst = arith.constant dense<0.000000e+00> : vector<8x4xf32>
    %5 = vector.multi_reduction <add>, %4, %cst [2] : vector<8x4x128xf32> to vector<8x4xf32>
    %6 = arith.addf %3, %5 : vector<8x4xf32>
    %c0_5 = arith.constant 0 : index
    %c0_6 = arith.constant 0 : index
    %7 = vector.load %arg10[%c0_5, %c0_6] : memref<8x4xf32, #tpu.memory_space<vmem>>, vector<8x4xf32>
    tpu.vector_store %arg10[%c0_5, %c0_6], %6 {strides = array<i32>} : memref<8x4xf32, #tpu.memory_space<vmem>>, vector<8x4xf32>,
    %c1_i32 = arith.constant 1 : i32
    %8 = arith.cmpi eq, %arg1, %c1_i32 : i32
    %9 = arith.extui %8 : i1 to i32
    %c0_i32_7 = arith.constant 0 : i32
    %10 = arith.cmpi ne, %9, %c0_i32_7 : i32
    scf.if %10 {
      %c0_8 = arith.constant 0 : index
      %c0_9 = arith.constant 0 : index
      %11 = vector.load %arg10[%c0_8, %c0_9] : memref<8x4xf32, #tpu.memory_space<vmem>>, vector<8x4xf32>
      %12 = arith.truncf %11 : vector<8x4xf32> to vector<8x4xbf16>
      %c0_10 = arith.constant 0 : index
      %c0_11 = arith.constant 0 : index
      %13 = vector.load %arg3[%c0_10, %c0_11] : memref<4x512xbf16, #tpu.memory_space<vmem>>, vector<4x512xbf16>
      %cst_12 = arith.constant dense<0.000000e+00> : vector<8x512xf32>
      %14 = tpu.matmul %12, %13, %cst_12 {dimension_numbers = #tpu.dot_dimension_numbers<[1], [0], [0], [1], [0, 0, 1, 1], [], []>} : vector<8x4xbf16>, vector<4x512xbf16>, vector<8x512xf32> -> vector<8x512xf32>
      %c0_13 = arith.constant 0 : index
      %c0_14 = arith.constant 0 : index
      %15 = vector.load %arg4[%c0_13, %c0_14] : memref<1x512xf32, #tpu.memory_space<vmem>>, vector<1x512xf32>
      %16 = vector.broadcast %15 : vector<1x512xf32> to vector<8x512xf32>
      %17 = arith.addf %14, %16 : vector<8x512xf32>
      %18 = arith.truncf %17 : vector<8x512xf32> to vector<8x512xbf16>
      %c0_15 = arith.constant 0 : index
      %c0_16 = arith.constant 0 : index
      %19 = vector.load %arg5[%c0_15, %c0_16] : memref<512x512xbf16, #tpu.memory_space<vmem>>, vector<512x512xbf16>
      %cst_17 = arith.constant dense<0.000000e+00> : vector<8x512xf32>
      %20 = tpu.matmul %18, %19, %cst_17 {dimension_numbers = #tpu.dot_dimension_numbers<[1], [0], [0], [1], [0, 0, 1, 1], [], []>} : vector<8x512xbf16>, vector<512x512xbf16>, vector<8x512xf32> -> vector<8x512xf32>
      %c0_18 = arith.constant 0 : index
      %c0_19 = arith.constant 0 : index
      %21 = vector.load %arg6[%c0_18, %c0_19] : memref<1x512xf32, #tpu.memory_space<vmem>>, vector<1x512xf32>
      %22 = vector.broadcast %21 : vector<1x512xf32> to vector<8x512xf32>
      %23 = arith.addf %20, %22 : vector<8x512xf32>
      %cst_20 = arith.constant 0.000000e+00 : f32
      %24 = vector.broadcast %cst_20 : f32 to vector<8x512xf32>
      %25 = arith.maximumf %23, %24 : vector<8x512xf32>
      %26 = arith.truncf %25 : vector<8x512xf32> to vector<8x512xbf16>
      %c0_21 = arith.constant 0 : index
      %c0_22 = arith.constant 0 : index
      %27 = vector.load %arg7[%c0_21, %c0_22] : memref<512x128xbf16, #tpu.memory_space<vmem>>, vector<512x128xbf16>
      %cst_23 = arith.constant dense<0.000000e+00> : vector<8x128xf32>
      %28 = tpu.matmul %26, %27, %cst_23 {dimension_numbers = #tpu.dot_dimension_numbers<[1], [0], [0], [1], [0, 0, 1, 1], [], []>} : vector<8x512xbf16>, vector<512x128xbf16>, vector<8x128xf32> -> vector<8x128xf32>
      %c0_24 = arith.constant 0 : index
      %c0_25 = arith.constant 0 : index
      %29 = vector.load %arg8[%c0_24, %c0_25] : memref<1x128xf32, #tpu.memory_space<vmem>>, vector<1x128xf32>
      %30 = vector.broadcast %29 : vector<1x128xf32> to vector<8x128xf32>
      %31 = arith.addf %28, %30 : vector<8x128xf32>
      %c0_26 = arith.constant 0 : index
      %c0_27 = arith.constant 0 : index
      %32 = vector.load %arg9[%c0_26, %c0_27] : memref<8x128xf32, #tpu.memory_space<vmem>>, vector<8x128xf32>
      tpu.vector_store %arg9[%c0_26, %c0_27], %31 {strides = array<i32>} : memref<8x128xf32, #tpu.memory_space<vmem>>, vector<8x128xf32>,
    } else {
    }
    return
  }
  func.func @transform_0(%arg0: i32, %arg1: i32) -> (i32, i32, i32) {
    %c0_i32 = arith.constant 0 : i32
    %c0_i32_0 = arith.constant 0 : i32
    return %arg0, %c0_i32, %arg1 : i32, i32, i32
  }
  func.func @transform_1(%arg0: i32, %arg1: i32) -> (i32, i32) {
    %c0_i32 = arith.constant 0 : i32
    %c0_i32_0 = arith.constant 0 : i32
    %c0_i32_1 = arith.constant 0 : i32
    return %c0_i32, %c0_i32_0 : i32, i32
  }
  func.func @transform_2(%arg0: i32, %arg1: i32) -> (i32, i32) {
    %c0_i32 = arith.constant 0 : i32
    %c0_i32_0 = arith.constant 0 : i32
    %c0_i32_1 = arith.constant 0 : i32
    return %c0_i32, %c0_i32_0 : i32, i32
  }
  func.func @transform_3(%arg0: i32, %arg1: i32) -> (i32, i32) {
    %c0_i32 = arith.constant 0 : i32
    %c0_i32_0 = arith.constant 0 : i32
    %c0_i32_1 = arith.constant 0 : i32
    return %c0_i32, %c0_i32_0 : i32, i32
  }
  func.func @transform_4(%arg0: i32, %arg1: i32) -> (i32, i32) {
    %c0_i32 = arith.constant 0 : i32
    %c0_i32_0 = arith.constant 0 : i32
    %c0_i32_1 = arith.constant 0 : i32
    return %c0_i32, %c0_i32_0 : i32, i32
  }
  func.func @transform_5(%arg0: i32, %arg1: i32) -> (i32, i32) {
    %c0_i32 = arith.constant 0 : i32
    %c0_i32_0 = arith.constant 0 : i32
    %c0_i32_1 = arith.constant 0 : i32
    return %c0_i32, %c0_i32_0 : i32, i32
  }
  func.func @transform_6(%arg0: i32, %arg1: i32) -> (i32, i32) {
    %c0_i32 = arith.constant 0 : i32
    %c0_i32_0 = arith.constant 0 : i32
    %c0_i32_1 = arith.constant 0 : i32
    return %c0_i32, %c0_i32_0 : i32, i32
  }
  func.func @transform_7(%arg0: i32, %arg1: i32) -> (i32, i32) {
    %c0_i32 = arith.constant 0 : i32
    %c0_i32_0 = arith.constant 0 : i32
    return %arg0, %c0_i32 : i32, i32
  }
}

</mosaic_0001>

<bundles_post_ra>
// kernel: base_forward.1
= control target key start
LH: loop header
LB: loop body
LE: loop exit
PB: predicated region body
PF: predicated region fallthrough
CT: control target
= control target key end

     0   :  { %s2561_s24 = smov 0   ;;  %s2563_s25 = smov 0   ;;  %s3162_s0 = inlined_call_operand.vmem [shape: f32[8,4,256], index: 0, kind: input, shape index: {}]   ;;  %s3163_s1 = inlined_call_operand.vmem [shape: bf16[4,512], index: 1, kind: input, shape index: {}]   ;;  %s3164_s2 = inlined_call_operand.vmem [shape: f32[1,512], index: 2, kind: input, shape index: {}]   ;;  %s3165_s3 = inlined_call_operand.vmem [shape: bf16[512,512], index: 3, kind: input, shape index: {}]   ;;  %s3166_s4 = inlined_call_operand.vmem [shape: f32[1,512], index: 4, kind: input, shape index: {}]   ;;  %s3167_s5 = inlined_call_operand.vmem [shape: bf16[512,128], index: 5, kind: input, shape index: {}]   ;;  %s3168_s6 = inlined_call_operand.vmem [shape: f32[1,128], index: 6, kind: input, shape index: {}]   ;;  %s3169_s7 = inlined_call_operand.vmem [shape: f32[8,128], index: 7, kind: output, shape index: {}]  }
   0x1   :  { %s2565_s26 = smov 0   ;;  %s2567_s27 = smov 0  }
   0x2   :  { %s2569_s28 = smov 0  }
   0x3 LB: > { %s26_s29 = sadd.s32 1, %s2512_s27  ;;  %p45_p1 = scmp.ne.s32.totalorder %s2504_s25, %s2500_s24  ;;  %s2516_s28 = sphi %s2569_s28, %s17_s28   ;;  %s2512_s27 = sphi %s2567_s27, %s3173_s27   ;;  %s2508_s26 = sphi %s2565_s26, %s3172_s26   ;;  %s2504_s25 = sphi %s2563_s25, %s3171_s25   ;;  %s2500_s24 = sphi %s2561_s24, %s3170_s24  }
   0x4   : > { %p27_p0 = scmp.ge.s32.totalorder %s26_s29, 2  ;;  %p46_p2 = scmp.eq.s32.totalorder %s2516_s28, 0 }
   0x5   : > { %s38_s8 = sadd.s32 1, %s2504_s25  ;;  %p1991_p5 = scmp.ge.s32.totalorder %s2516_s28, 2 }
   0x6   : > { %s3175_s29 = smov (%p27_p0, %s26_s29), 0  ;;  %p47_p3 = por %p46_p2, %p45_p1 }
   0x7   : > { %s34_s30 = ssub.s32 %s2512_s27, %s3175_s29  ;;  %241 = sbr.rel (%p1991_p5) target bundleno = 21 (0x15), region = 40 }
   0x8   : > { %p36_p4 = scmp.eq.s32.totalorder %s34_s30, 0 }
   0xa   : > { %s2596_s9 = scalar_select %p36_p4, %s2504_s25, %s38_s8  }
   0xc   : > { %244 = sbr.rel (!%p47_p3) target bundleno = 21 (0x15), region = 44  ;;  %s246_s10 = sand.u32 (%p47_p3), 1, %s2504_s25  }
   0xd   : > { %s1993_s11 = sshll.u32 (%p47_p3), %s2512_s27, 2  ;;  %s1992_s12 = sshll.u32 (%p47_p3), %s246_s10, 5 }
   0xe   : > { %s253_s15 = scalar_lea.vmem (%p47_p3), %s3162_s0, %s1993_s11  ;;  %s248_s16 = scalar_lea.vmem (%p47_p3), [#allocation3], %s1992_s12 }
   0xf   : > { %v270_v0 = vld [vmem:[%s253_s15] sm:$0xf] (%p47_p3)  ;;  %v272_v1 = vld [vmem:[%s253_s15 + $0x8] sm:$0xf] (%p47_p3)  ;;  %v274_v2 = vld [vmem:[%s253_s15 + $0x10] sm:$0xf] (%p47_p3) }
  0x10   : > { %271 = vst [vmem:[%s248_s16] sm:$0xf] (%p47_p3), %v270_v0  ;;  %273 = vst [vmem:[%s248_s16 + $0x4] sm:$0xf] (%p47_p3), %v272_v1  ;;  %v276_v3 = vld [vmem:[%s253_s15 + $0x18] sm:$0xf] (%p47_p3) }
  0x11   : > { %v278_v4 = vld [vmem:[%s253_s15 + $0x20] sm:$0xf]  ;;  %275 = vst [vmem:[%s248_s16 + $0x8] sm:$0xf] %v274_v2  ;;  %277 = vst [vmem:[%s248_s16 + $0xc] sm:$0xf] %v276_v3 }
  0x12   : > { %279 = vst [vmem:[%s248_s16 + $0x10] sm:$0xf] %v278_v4  ;;  %v280_v5 = vld [vmem:[%s253_s15 + $0x28] sm:$0xf]  ;;  %v282_v6 = vld [vmem:[%s253_s15 + $0x30] sm:$0xf] }
  0x13   : > { %v284_v7 = vld [vmem:[%s253_s15 + $0x38] sm:$0xf]  ;;  %281 = vst [vmem:[%s248_s16 + $0x14] sm:$0xf] %v280_v5  ;;  %283 = vst [vmem:[%s248_s16 + $0x18] sm:$0xf] %v282_v6 }
  0x14   : > { %285 = vst [vmem:[%s248_s16 + $0x1c] sm:$0xf] %v284_v7 }
  0x15 PF: > { %p1994_p6 = scmp.ge.s32.totalorder %s2516_s28, 1  ;;  %p324_p7 = scmp.lt.s32.totalorder %s2516_s28, 3 }
  0x17   : > { %p325_p8 = pnand %p1994_p6, %p324_p7 }
  0x18   : > { %s331_s17 = sand.u32 (!%p325_p8), 1, %s2500_s24   ;;  %p1996_p9 = scmp.ne.s32.totalorder (!%p325_p8), %s2508_s26, 0 }
  0x19   : > { %328 = sbr.rel (%p325_p8) target bundleno = 879 (0x36f), region = 85  ;;  %s1995_s18 = sshll.u32 (!%p325_p8), %s331_s17, 5 }
  0x1a   : > { %s333_s19 = scalar_lea.vmem (!%p325_p8), [#allocation3], %s1995_s18 }
  0x1e   : > { %370 = sbr.rel (%p1996_p9) target bundleno = 37 (0x25), region = 93 }
  0x23   : > { %vm371_vm0 = vcmask 31744   ;;  %v2518_v8 = vmov 0.0  }
  0x24   : > { %372 = vst.msk [vmem:[#allocation2] sm:$0xff] %vm371_vm0, %v2518_v8 }
  0x25 PF: > { %v374_v9 = vld [vmem:[%s333_s19] sm:$0xf]  ;;  %vm382_vm1 = vcmask 1043456   ;;  %v376_v10 = vld [vmem:[%s333_s19 + $0x8] sm:$0xf]  ;;  %v415_v25 = vlaneseq  ;;  %vm449_vm2 = vcmask 1041409  }
  0x26   : > { %v383_v11 = vsel %vm382_vm1, %v374_v9, 0.0  ;;  %v389_v12 = vsel %vm382_vm1, %v376_v10, 0.0  ;;  %v375_v13 = vld [vmem:[%s333_s19 + $0x4] sm:$0xf]  ;;  %v377_v14 = vld [vmem:[%s333_s19 + $0xc] sm:$0xf] }
  0x27   : > { %384 = vadd.xlane.f32.xlu0 %v383_v11  ;;  %390 = vadd.xlane.f32.xlu1 %v389_v12  ;;  %v386_v15 = vsel %vm382_vm1, %v375_v13, 0.0  ;;  %v392_v16 = vsel %vm382_vm1, %v377_v14, 0.0  ;;  %v378_v17 = vld [vmem:[%s333_s19 + $0x10] sm:$0xf]  ;;  %v379_v18 = vld [vmem:[%s333_s19 + $0x14] sm:$0xf] }
  0x28   : > { %v395_v19 = vsel %vm382_vm1, %v378_v17, 0.0  ;;  %v398_v20 = vsel %vm382_vm1, %v379_v18, 0.0  ;;  %v380_v21 = vld [vmem:[%s333_s19 + $0x18] sm:$0xf]  ;;  %v381_v22 = vld [vmem:[%s333_s19 + $0x1c] sm:$0xf] }
  0x29   : > { %v401_v23 = vsel %vm382_vm1, %v380_v21, 0.0  ;;  %v404_v24 = vsel %vm382_vm1, %v381_v22, 0.0  ;;  %v416_v26 = vand.u32 127, %v415_v25  ;;  %v2616_v27 = vshrl.u32 %v415_v25, 7  ;;  %p1997_p10 = scmp.ne.s32.totalorder %s2508_s26, 1 }
  0x2a   : > { %vm451_vm3 = vcmask 1042434   ;;  %vm453_vm4 = vcmask 1043459   ;;  %vm455_vm5 = vcmask 1044484   ;;  %vm457_vm6 = vcmask 1045509  }
  0x2b   : > { %387 = vadd.xlane.f32.xlu0 %v386_v15  ;;  %393 = vadd.xlane.f32.xlu1 %v392_v16  ;;  %v419_v30 = vsub.s32 %v416_v26, %v2616_v27  ;;  %vm459_vm7 = vcmask 1046534   ;;  %vm461_vm8 = vcmask 1047559   ;;  %v373_v50 = vld [vmem:[#allocation2] sm:$0xff]  ;;  %vm465_vm9 = vcmask 31744  }
  0x2f   : > { %396 = vadd.xlane.f32.xlu0 %v395_v19  ;;  %399 = vadd.xlane.f32.xlu1 %v398_v20 }
  0x33   : > { %402 = vadd.xlane.f32.xlu0 %v401_v23  ;;  %405 = vadd.xlane.f32.xlu1 %v404_v24 }
  0xb0   : > { %v385_v28 = vpop.xlane.xlu0 %384  ;;  %v391_v29 = vpop.xlane.xlu1 %390 }
  0xb1   : > { %v420_v33 = vrot.slane %v385_v28, %v419_v30  ;;  %v428_v36 = vrot.slane %v391_v29, %v419_v30 }
  0xb4   : > { %v388_v31 = vpop.xlane.xlu0 %387  ;;  %v394_v32 = vpop.xlane.xlu1 %393 }
  0xb5   : > { %v424_v34 = vrot.slane %v388_v31, %v419_v30  ;;  %v432_v35 = vrot.slane %v394_v32, %v419_v30 }
  0xb7   : > { %v450_v37 = vsel %vm449_vm2, %v424_v34, %v420_v33 }
  0xb8   : > { %v452_v38 = vsel %vm451_vm3, %v428_v36, %v450_v37  ;;  %v397_v39 = vpop.xlane.xlu0 %396  ;;  %v400_v40 = vpop.xlane.xlu1 %399 }
  0xb9   : > { %v454_v41 = vsel %vm453_vm4, %v432_v35, %v452_v38  ;;  %v436_v42 = vrot.slane %v397_v39, %v419_v30  ;;  %v440_v43 = vrot.slane %v400_v40, %v419_v30 }
  0xbb   : > { %v456_v44 = vsel %vm455_vm5, %v436_v42, %v454_v41 }
  0xbc   : > { %v403_v45 = vpop.xlane.xlu0 %402  ;;  %v406_v46 = vpop.xlane.xlu1 %405  ;;  %v458_v49 = vsel %vm457_vm6, %v440_v43, %v456_v44 }
  0xbd   : > { %v444_v47 = vrot.slane %v403_v45, %v419_v30  ;;  %v448_v48 = vrot.slane %v406_v46, %v419_v30 }
  0xbf   : > { %v460_v51 = vsel %vm459_vm7, %v444_v47, %v458_v49  ;;  %470 = sbr.rel (%p1997_p10) target bundleno = 879 (0x36f), region = 97 }
  0xc0   : > { %v462_v52 = vsel %vm461_vm8, %v448_v48, %v460_v51 }
  0xc1   : > { %v464_v53 = vadd.f32 %v462_v52, %v373_v50 }
  0xc3   : > { %466 = vst.msk [vmem:[#allocation2] sm:$0xff] %vm465_vm9, %v464_v53 }
  0xc4   : > { %v473_v54 = vld [vmem:[%s3163_s1] sm:$0xff]  ;;  %v2519_v55 = vmov 1983009808   ;;  %v2520_v57 = vmov 0   ;;  %vm517_vm10 = vcmask 1041408  }
  0xc5   : > { %v499_v56 = vunpack.c.l.s4 %v2519_v55  ;;  %562 = vmatprep.mubr.bf16.mxu0 %v2520_v57  ;;  %603 = vmatprep.mubr.bf16.mxu1 %v2520_v57  ;;  %v497_v59 = vcombine.high %v473_v54, %v473_v54  ;;  %v2256_v0 = vld [vmem:[%s3165_s3 + $0xe4] ss:$16 sps:$4 sm:$0xff]   ;;  %v2254_v7 = vld [vmem:[%s3165_s3 + $0xe0] ss:$16 sps:$4 sm:$0xff]  }
  0xc6   : > { %v2259_v5 = vld [vmem:[%s3165_s3 + $0x2e4] ss:$16 sps:$4 sm:$0xff]   ;;  %v2257_v8 = vld [vmem:[%s3165_s3 + $0x2e0] ss:$16 sps:$4 sm:$0xff]  }
  0xc7   : > { %v500_v58 = vunpack.c.0.s8 %v499_v56  ;;  %v2262_v9 = vld [vmem:[%s3165_s3 + $0xc4] ss:$16 sps:$4 sm:$0xff]   ;;  %v2260_v11 = vld [vmem:[%s3165_s3 + $0xc0] ss:$16 sps:$4 sm:$0xff]  }
  0xc8   : > { %v2265_v10 = vld [vmem:[%s3165_s3 + $0x2c4] ss:$16 sps:$4 sm:$0xff]   ;;  %v2263_v12 = vld [vmem:[%s3165_s3 + $0x2c0] ss:$16 sps:$4 sm:$0xff]  }
  0xc9   : > { %v503_v60 = vsub.s32 %v500_v58, %v2616_v27  ;;  %v2268_v13 = vld [vmem:[%s3165_s3 + $0xa4] ss:$16 sps:$4 sm:$0xff]   ;;  %v2266_v15 = vld [vmem:[%s3165_s3 + $0xa0] ss:$16 sps:$4 sm:$0xff]  }
  0xca   : > { %v471_v63 = vld [vmem:[#allocation2] sm:$0xff] }
  0xcb   : > { %v504_v61 = vrot.slane %v473_v54, %v503_v60  ;;  %v511_v62 = vrot.slane %v497_v59, %v503_v60  ;;  %v472_v6 = vpack.c.bf16 %v471_v63, %v471_v63  ;;  %v2271_v14 = vld [vmem:[%s3165_s3 + $0x2a4] ss:$16 sps:$4 sm:$0xff]   ;;  %v2269_v16 = vld [vmem:[%s3165_s3 + $0x2a0] ss:$16 sps:$4 sm:$0xff]  }
  0xcc   : > { %v2274_v17 = vld [vmem:[%s3165_s3 + $0x84] ss:$16 sps:$4 sm:$0xff]   ;;  %v2272_v19 = vld [vmem:[%s3165_s3 + $0x80] ss:$16 sps:$4 sm:$0xff]  }
  0xcd   : > { %v512_v1 = vcombine.high %v504_v61, %v504_v61  ;;  %v513_v2 = vcombine.high %v511_v62, %v511_v62  ;;  %v519_v3 = vsel %vm517_vm10, %v504_v61, 0  ;;  %v525_v4 = vsel %vm517_vm10, %v511_v62, 0  ;;  %v2277_v18 = vld [vmem:[%s3165_s3 + $0x284] ss:$16 sps:$4 sm:$0xff]   ;;  %v2275_v20 = vld [vmem:[%s3165_s3 + $0x280] ss:$16 sps:$4 sm:$0xff]  }
  0xce   : > { %v2280_v21 = vld [vmem:[%s3165_s3 + $0x64] ss:$16 sps:$4 sm:$0xff]   ;;  %v2278_v23 = vld [vmem:[%s3165_s3 + $0x60] ss:$16 sps:$4 sm:$0xff]  }
  0xcf   : > { %1998 = vmatprep.subr.msk.bf16.mxu0 %vm517_vm10, %v512_v1  ;;  %2000 = vmatprep.subr.msk.bf16.mxu1 %vm517_vm10, %v513_v2  ;;  %v2283_v22 = vld [vmem:[%s3165_s3 + $0x264] ss:$16 sps:$4 sm:$0xff]   ;;  %v2281_v24 = vld [vmem:[%s3165_s3 + $0x260] ss:$16 sps:$4 sm:$0xff]  }
  0xd0   : > { %545 = vmatpush1.bf16.msra.mxu0 %v519_v3  ;;  %586 = vmatpush1.bf16.msra.mxu1 %v525_v4  ;;  %v2286_v25 = vld [vmem:[%s3165_s3 + $0x44] ss:$16 sps:$4 sm:$0xff]   ;;  %v2284_v28 = vld [vmem:[%s3165_s3 + $0x40] ss:$16 sps:$4 sm:$0xff]  }
  0xd1   : > { %1406 = vmatprep.subr.bf16.mxu0 %v2256_v0  ;;  %1447 = vmatprep.subr.bf16.mxu1 %v2259_v5  ;;  %v2289_v26 = vld [vmem:[%s3165_s3 + $0x244] ss:$16 sps:$4 sm:$0xff]   ;;  %v2287_v29 = vld [vmem:[%s3165_s3 + $0x240] ss:$16 sps:$4 sm:$0xff]  }
  0xd2   : > { %v2292_v30 = vld [vmem:[%s3165_s3 + $0x24] ss:$16 sps:$4 sm:$0xff]   ;;  %v2290_v32 = vld [vmem:[%s3165_s3 + $0x20] ss:$16 sps:$4 sm:$0xff]  }
  0xd3   : > { %1999 = vmatmul.mubr.msk.bf16.vlgmr.msra.gmra.mxu0 %vm465_vm9, %v472_v6  ;;  %2001 = vmatmul.mubr.msk.bf16.vlgmr.msra.gmra.mxu1 %vm465_vm9, %v472_v6  ;;  %v2295_v31 = vld [vmem:[%s3165_s3 + $0x224] ss:$16 sps:$4 sm:$0xff]   ;;  %v2293_v33 = vld [vmem:[%s3165_s3 + $0x220] ss:$16 sps:$4 sm:$0xff]   ;;  %v2352_v6 = vld [vmem:[%s3165_s3 + $0xec] ss:$16 sps:$4 sm:$0xff]  }
  0xd4   : > { %1407 = vmatpush1.bf16.msra.mxu0 %v2254_v7  ;;  %1448 = vmatpush1.bf16.msra.mxu1 %v2257_v8  ;;  %v2298_v34 = vld [vmem:[%s3165_s3 + $0x4] ss:$16 sps:$4 sm:$0xff]   ;;  %v2296_v36 = vld [vmem:[%s3165_s3] ss:$16 sps:$4 sm:$0xff]   ;;  %v2355_v7 = vld [vmem:[%s3165_s3 + $0x2ec] ss:$16 sps:$4 sm:$0xff]  }
  0xd5   : > { %1408 = vmatprep.subr.bf16.mxu0 %v2262_v9  ;;  %1449 = vmatprep.subr.bf16.mxu1 %v2265_v10  ;;  %v2301_v35 = vld [vmem:[%s3165_s3 + $0x204] ss:$16 sps:$4 sm:$0xff]   ;;  %v2299_v37 = vld [vmem:[%s3165_s3 + $0x200] ss:$16 sps:$4 sm:$0xff]   ;;  %v486_v8 = vsub.s32 2, %v2616_v27  ;;  %v478_v9 = vsub.s32 0, %v2616_v27 }
  0xd6   : > { %v2304_v38 = vld [vmem:[%s3165_s3 + $0x1e4] ss:$16 sps:$4 sm:$0xff]   ;;  %v2302_v40 = vld [vmem:[%s3165_s3 + $0x1e0] ss:$16 sps:$4 sm:$0xff]  }
  0xd7   : > { %v2307_v39 = vld [vmem:[%s3165_s3 + $0x3e4] ss:$16 sps:$4 sm:$0xff]   ;;  %v2305_v41 = vld [vmem:[%s3165_s3 + $0x3e0] ss:$16 sps:$4 sm:$0xff]  }
  0xd8   : > { %1409 = vmatpush1.bf16.msra.mxu0 %v2260_v11  ;;  %1450 = vmatpush1.bf16.msra.mxu1 %v2263_v12  ;;  %v2310_v42 = vld [vmem:[%s3165_s3 + $0x1c4] ss:$16 sps:$4 sm:$0xff]   ;;  %v2308_v44 = vld [vmem:[%s3165_s3 + $0x1c0] ss:$16 sps:$4 sm:$0xff]   ;;  %v482_v11 = vsub.s32 1, %v2616_v27  ;;  %v490_v12 = vsub.s32 3, %v2616_v27 }
  0xd9   : > { %1410 = vmatprep.subr.bf16.mxu0 %v2268_v13  ;;  %1451 = vmatprep.subr.bf16.mxu1 %v2271_v14  ;;  %v2313_v43 = vld [vmem:[%s3165_s3 + $0x3c4] ss:$16 sps:$4 sm:$0xff]   ;;  %v2311_v45 = vld [vmem:[%s3165_s3 + $0x3c0] ss:$16 sps:$4 sm:$0xff]  }
  0xda   : > { %v2316_v46 = vld [vmem:[%s3165_s3 + $0x1a4] ss:$16 sps:$4 sm:$0xff]   ;;  %v2314_v48 = vld [vmem:[%s3165_s3 + $0x1a0] ss:$16 sps:$4 sm:$0xff]  }
  0xdb   : > { %v2319_v47 = vld [vmem:[%s3165_s3 + $0x3a4] ss:$16 sps:$4 sm:$0xff]   ;;  %v2317_v49 = vld [vmem:[%s3165_s3 + $0x3a0] ss:$16 sps:$4 sm:$0xff]  }
  0xdc   : > { %1411 = vmatpush1.bf16.msra.mxu0 %v2266_v15  ;;  %1452 = vmatpush1.bf16.msra.mxu1 %v2269_v16  ;;  %v2322_v50 = vld [vmem:[%s3165_s3 + $0x184] ss:$16 sps:$4 sm:$0xff]   ;;  %v2320_v52 = vld [vmem:[%s3165_s3 + $0x180] ss:$16 sps:$4 sm:$0xff]  }
  0xdd   : > { %1412 = vmatprep.subr.bf16.mxu0 %v2274_v17  ;;  %1453 = vmatprep.subr.bf16.mxu1 %v2277_v18  ;;  %v2325_v51 = vld [vmem:[%s3165_s3 + $0x384] ss:$16 sps:$4 sm:$0xff]   ;;  %v2323_v53 = vld [vmem:[%s3165_s3 + $0x380] ss:$16 sps:$4 sm:$0xff]  }
  0xde   : > { %v2328_v54 = vld [vmem:[%s3165_s3 + $0x164] ss:$16 sps:$4 sm:$0xff]   ;;  %v2326_v56 = vld [vmem:[%s3165_s3 + $0x160] ss:$16 sps:$4 sm:$0xff]  }
  0xdf   : > { %v2331_v55 = vld [vmem:[%s3165_s3 + $0x364] ss:$16 sps:$4 sm:$0xff]   ;;  %v2329_v57 = vld [vmem:[%s3165_s3 + $0x360] ss:$16 sps:$4 sm:$0xff]  }
  0xe0   : > { %1413 = vmatpush1.bf16.msra.mxu0 %v2272_v19  ;;  %1454 = vmatpush1.bf16.msra.mxu1 %v2275_v20  ;;  %v2334_v58 = vld [vmem:[%s3165_s3 + $0x144] ss:$16 sps:$4 sm:$0xff]   ;;  %v2332_v60 = vld [vmem:[%s3165_s3 + $0x140] ss:$16 sps:$4 sm:$0xff]  }
  0xe1   : > { %1414 = vmatprep.subr.bf16.mxu0 %v2280_v21  ;;  %1455 = vmatprep.subr.bf16.mxu1 %v2283_v22  ;;  %v2337_v59 = vld [vmem:[%s3165_s3 + $0x344] ss:$16 sps:$4 sm:$0xff]   ;;  %v2335_v61 = vld [vmem:[%s3165_s3 + $0x340] ss:$16 sps:$4 sm:$0xff]  }
  0xe2   : > { %v2340_v62 = vld [vmem:[%s3165_s3 + $0x124] ss:$16 sps:$4 sm:$0xff]   ;;  %v2338_v0 = vld [vmem:[%s3165_s3 + $0x120] ss:$16 sps:$4 sm:$0xff]  }
  0xe3   : > { %v2343_v63 = vld [vmem:[%s3165_s3 + $0x324] ss:$16 sps:$4 sm:$0xff]   ;;  %v2341_v1 = vld [vmem:[%s3165_s3 + $0x320] ss:$16 sps:$4 sm:$0xff]  }
  0xe4   : > { %1415 = vmatpush1.bf16.msra.mxu0 %v2278_v23  ;;  %1456 = vmatpush1.bf16.msra.mxu1 %v2281_v24  ;;  %v2346_v2 = vld [vmem:[%s3165_s3 + $0x104] ss:$16 sps:$4 sm:$0xff]   ;;  %v2344_v4 = vld [vmem:[%s3165_s3 + $0x100] ss:$16 sps:$4 sm:$0xff]  }
  0xe5   : > { %1416 = vmatprep.subr.bf16.mxu0 %v2286_v25  ;;  %1457 = vmatprep.subr.bf16.mxu1 %v2289_v26  ;;  %v2349_v3 = vld [vmem:[%s3165_s3 + $0x304] ss:$16 sps:$4 sm:$0xff]   ;;  %v2347_v5 = vld [vmem:[%s3165_s3 + $0x300] ss:$16 sps:$4 sm:$0xff]  }
  0xe6   : > { %v474_v10 = vld [vmem:[%s3164_s2] sm:$0xf] }
  0xe7   : > { %v487_v13 = vrot.slane %v474_v10, %v486_v8  ;;  %v479_v14 = vrot.slane %v474_v10, %v478_v9  ;;  %v483_v15 = vrot.slane %v474_v10, %v482_v11  ;;  %v491_v16 = vrot.slane %v474_v10, %v490_v12  ;;  %v2412_v10 = vld [vmem:[%s3165_s3 + $0x1ac] ss:$16 sps:$4 sm:$0xff]  }
  0xe8   : > { %1417 = vmatpush1.bf16.msra.mxu0 %v2284_v28  ;;  %1458 = vmatpush1.bf16.msra.mxu1 %v2287_v29 }
  0xe9   : > { %1418 = vmatprep.subr.bf16.mxu0 %v2292_v30  ;;  %1459 = vmatprep.subr.bf16.mxu1 %v2295_v31  ;;  %v2350_v31 = vld [vmem:[%s3165_s3 + $0xe8] ss:$16 sps:$4 sm:$0xff]  }
  0xec   : > { %1419 = vmatpush1.bf16.msra.mxu0 %v2290_v32  ;;  %1460 = vmatpush1.bf16.msra.mxu1 %v2293_v33  ;;  %v2353_v32 = vld [vmem:[%s3165_s3 + $0x2e8] ss:$16 sps:$4 sm:$0xff]  }
  0xed   : > { %1420 = vmatprep.subr.bf16.mxu0 %v2298_v34  ;;  %1461 = vmatprep.subr.bf16.mxu1 %v2301_v35 }
  0xf0   : > { %1421 = vmatpush1.bf16.msra.mxu0 %v2296_v36  ;;  %1462 = vmatpush1.bf16.msra.mxu1 %v2299_v37  ;;  %v2358_v36 = vld [vmem:[%s3165_s3 + $0xcc] ss:$16 sps:$4 sm:$0xff]  }
  0xf1   : > { %1422 = vmatprep.subr.bf16.mxu0 %v2304_v38  ;;  %1463 = vmatprep.subr.bf16.mxu1 %v2307_v39  ;;  %v2361_v37 = vld [vmem:[%s3165_s3 + $0x2cc] ss:$16 sps:$4 sm:$0xff]   ;;  %v2356_v38 = vld [vmem:[%s3165_s3 + $0xc8] ss:$16 sps:$4 sm:$0xff]  }
  0xf2   : > { %v2359_v39 = vld [vmem:[%s3165_s3 + $0x2c8] ss:$16 sps:$4 sm:$0xff]  }
  0xf4   : > { %1423 = vmatpush2.bf16.msra.mxu0 %v2302_v40  ;;  %1464 = vmatpush2.bf16.msra.mxu1 %v2305_v41  ;;  %v2364_v40 = vld [vmem:[%s3165_s3 + $0xac] ss:$16 sps:$4 sm:$0xff]  }
  0xf5   : > { %1424 = vmatprep.subr.bf16.mxu0 %v2310_v42  ;;  %1465 = vmatprep.subr.bf16.mxu1 %v2313_v43  ;;  %v2367_v41 = vld [vmem:[%s3165_s3 + $0x2ac] ss:$16 sps:$4 sm:$0xff]   ;;  %v2362_v42 = vld [vmem:[%s3165_s3 + $0xa8] ss:$16 sps:$4 sm:$0xff]  }
  0xf6   : > { %v2365_v43 = vld [vmem:[%s3165_s3 + $0x2a8] ss:$16 sps:$4 sm:$0xff]  }
  0xf8   : > { %1425 = vmatpush2.bf16.msra.mxu0 %v2308_v44  ;;  %1466 = vmatpush2.bf16.msra.mxu1 %v2311_v45  ;;  %v2370_v44 = vld [vmem:[%s3165_s3 + $0x8c] ss:$16 sps:$4 sm:$0xff]  }
  0xf9   : > { %1426 = vmatprep.subr.bf16.mxu0 %v2316_v46  ;;  %1467 = vmatprep.subr.bf16.mxu1 %v2319_v47  ;;  %v2373_v45 = vld [vmem:[%s3165_s3 + $0x28c] ss:$16 sps:$4 sm:$0xff]   ;;  %v2368_v46 = vld [vmem:[%s3165_s3 + $0x88] ss:$16 sps:$4 sm:$0xff]  }
  0xfa   : > { %v2371_v47 = vld [vmem:[%s3165_s3 + $0x288] ss:$16 sps:$4 sm:$0xff]  }
  0xfc   : > { %1427 = vmatpush2.bf16.msra.mxu0 %v2314_v48  ;;  %1468 = vmatpush2.bf16.msra.mxu1 %v2317_v49  ;;  %v2376_v48 = vld [vmem:[%s3165_s3 + $0x6c] ss:$16 sps:$4 sm:$0xff]  }
  0xfd   : > { %1428 = vmatprep.subr.bf16.mxu0 %v2322_v50  ;;  %1469 = vmatprep.subr.bf16.mxu1 %v2325_v51  ;;  %v2379_v49 = vld [vmem:[%s3165_s3 + $0x26c] ss:$16 sps:$4 sm:$0xff]   ;;  %v2374_v50 = vld [vmem:[%s3165_s3 + $0x68] ss:$16 sps:$4 sm:$0xff]  }
  0xfe   : > { %v2377_v51 = vld [vmem:[%s3165_s3 + $0x268] ss:$16 sps:$4 sm:$0xff]  }
 0x100   : > { %1429 = vmatpush2.bf16.msra.mxu0 %v2320_v52  ;;  %1470 = vmatpush2.bf16.msra.mxu1 %v2323_v53  ;;  %v2382_v52 = vld [vmem:[%s3165_s3 + $0x4c] ss:$16 sps:$4 sm:$0xff]  }
 0x101   : > { %1430 = vmatprep.subr.bf16.mxu0 %v2328_v54  ;;  %1471 = vmatprep.subr.bf16.mxu1 %v2331_v55  ;;  %v2385_v53 = vld [vmem:[%s3165_s3 + $0x24c] ss:$16 sps:$4 sm:$0xff]   ;;  %v2380_v54 = vld [vmem:[%s3165_s3 + $0x48] ss:$16 sps:$4 sm:$0xff]  }
 0x102   : > { %v2383_v55 = vld [vmem:[%s3165_s3 + $0x248] ss:$16 sps:$4 sm:$0xff]  }
 0x104   : > { %1431 = vmatpush2.bf16.msra.mxu0 %v2326_v56  ;;  %1472 = vmatpush2.bf16.msra.mxu1 %v2329_v57  ;;  %v2388_v56 = vld [vmem:[%s3165_s3 + $0x2c] ss:$16 sps:$4 sm:$0xff]  }
 0x105   : > { %1432 = vmatprep.subr.bf16.mxu0 %v2334_v58  ;;  %1473 = vmatprep.subr.bf16.mxu1 %v2337_v59  ;;  %v2391_v57 = vld [vmem:[%s3165_s3 + $0x22c] ss:$16 sps:$4 sm:$0xff]   ;;  %v2386_v58 = vld [vmem:[%s3165_s3 + $0x28] ss:$16 sps:$4 sm:$0xff]  }
 0x106   : > { %v2389_v59 = vld [vmem:[%s3165_s3 + $0x228] ss:$16 sps:$4 sm:$0xff]  }
 0x108   : > { %1433 = vmatpush2.bf16.msra.mxu0 %v2332_v60  ;;  %1474 = vmatpush2.bf16.msra.mxu1 %v2335_v61  ;;  %v2394_v60 = vld [vmem:[%s3165_s3 + $0xc] ss:$16 sps:$4 sm:$0xff]  }
 0x109   : > { %1434 = vmatprep.subr.bf16.mxu0 %v2340_v62  ;;  %1475 = vmatprep.subr.bf16.mxu1 %v2343_v63  ;;  %v2397_v61 = vld [vmem:[%s3165_s3 + $0x20c] ss:$16 sps:$4 sm:$0xff]   ;;  %v2392_v62 = vld [vmem:[%s3165_s3 + $0x8] ss:$16 sps:$4 sm:$0xff]  }
 0x10a   : > { %v2395_v63 = vld [vmem:[%s3165_s3 + $0x208] ss:$16 sps:$4 sm:$0xff]  }
 0x10c   : > { %1435 = vmatpush2.bf16.msra.mxu0 %v2338_v0  ;;  %1476 = vmatpush2.bf16.msra.mxu1 %v2341_v1  ;;  %v2400_v0 = vld [vmem:[%s3165_s3 + $0x1ec] ss:$16 sps:$4 sm:$0xff]  }
 0x10d   : > { %1436 = vmatprep.subr.bf16.mxu0 %v2346_v2  ;;  %1477 = vmatprep.subr.bf16.mxu1 %v2349_v3  ;;  %v2403_v1 = vld [vmem:[%s3165_s3 + $0x3ec] ss:$16 sps:$4 sm:$0xff]   ;;  %v2398_v2 = vld [vmem:[%s3165_s3 + $0x1e8] ss:$16 sps:$4 sm:$0xff]  }
 0x10e   : > { %v2401_v3 = vld [vmem:[%s3165_s3 + $0x3e8] ss:$16 sps:$4 sm:$0xff]  }
 0x110   : > { %1437 = vmatpush2.bf16.msra.mxu0 %v2344_v4  ;;  %1478 = vmatpush2.bf16.msra.mxu1 %v2347_v5  ;;  %v2406_v4 = vld [vmem:[%s3165_s3 + $0x1cc] ss:$16 sps:$4 sm:$0xff]  }
 0x111   : > { %1488 = vmatprep.subr.bf16.mxu0 %v2352_v6  ;;  %1529 = vmatprep.subr.bf16.mxu1 %v2355_v7  ;;  %v2409_v5 = vld [vmem:[%s3165_s3 + $0x3cc] ss:$16 sps:$4 sm:$0xff]   ;;  %v2404_v6 = vld [vmem:[%s3165_s3 + $0x1c8] ss:$16 sps:$4 sm:$0xff]  }
 0x112   : > { %v2407_v7 = vld [vmem:[%s3165_s3 + $0x3c8] ss:$16 sps:$4 sm:$0xff]  }
 0x193   : > { %v564_v17 = vpop.f32.mrf.mxu0  ;;  %v605_v18 = vpop.f32.mrf.mxu1 }
 0x194   : > { %v606_v19 = vadd.f32 %v605_v18, %v487_v13  ;;  %v565_v20 = vadd.f32 %v564_v17, %v479_v14  ;;  %v2415_v13 = vld [vmem:[%s3165_s3 + $0x3ac] ss:$16 sps:$4 sm:$0xff]   ;;  %v2410_v14 = vld [vmem:[%s3165_s3 + $0x1a8] ss:$16 sps:$4 sm:$0xff]  }
 0x195   : > { %v566_v21 = vpop.f32.mrf.mxu0  ;;  %v607_v22 = vpop.f32.mrf.mxu1  ;;  %v2421_v17 = vld [vmem:[%s3165_s3 + $0x38c] ss:$16 sps:$4 sm:$0xff]   ;;  %v2416_v18 = vld [vmem:[%s3165_s3 + $0x188] ss:$16 sps:$4 sm:$0xff]  }
 0x196   : > { %v567_v23 = vadd.f32 %v566_v21, %v483_v15  ;;  %v608_v24 = vadd.f32 %v607_v22, %v491_v16  ;;  %v2840_v25 = vpack.c.bf16 %v606_v19, %v606_v19  ;;  %v2848_v33 = vpack.c.bf16 %v565_v20, %v565_v20  ;;  %v2413_v15 = vld [vmem:[%s3165_s3 + $0x3a8] ss:$16 sps:$4 sm:$0xff]   ;;  %v2418_v16 = vld [vmem:[%s3165_s3 + $0x18c] ss:$16 sps:$4 sm:$0xff]  }
 0x197   : > { %v568_v26 = vpop.f32.mrf.mxu0  ;;  %v609_v28 = vpop.f32.mrf.mxu1  ;;  %v2419_v19 = vld [vmem:[%s3165_s3 + $0x388] ss:$16 sps:$4 sm:$0xff]   ;;  %v2424_v20 = vld [vmem:[%s3165_s3 + $0x16c] ss:$16 sps:$4 sm:$0xff]  }
 0x198   : > { %v613_v29 = vpack.c.bf16 %v567_v23, %v567_v23  ;;  %v615_v30 = vpack.c.bf16 %v608_v24, %v608_v24  ;;  %v2427_v21 = vld [vmem:[%s3165_s3 + $0x36c] ss:$16 sps:$4 sm:$0xff]   ;;  %v2422_v22 = vld [vmem:[%s3165_s3 + $0x168] ss:$16 sps:$4 sm:$0xff]  }
 0x199   : > { %v569_v34 = vpop.f32.mrf.mxu0  ;;  %v610_v35 = vpop.f32.mrf.mxu1  ;;  %v2425_v23 = vld [vmem:[%s3165_s3 + $0x368] ss:$16 sps:$4 sm:$0xff]   ;;  %v2430_v24 = vld [vmem:[%s3165_s3 + $0x14c] ss:$16 sps:$4 sm:$0xff]  }
 0x19a   : > { %1438 = vmatprep.mubr.bf16.mxu0 %v613_v29  ;;  %1479 = vmatprep.mubr.bf16.mxu1 %v615_v30  ;;  %v2433_v26 = vld [vmem:[%s3165_s3 + $0x34c] ss:$16 sps:$4 sm:$0xff]   ;;  %v2428_v28 = vld [vmem:[%s3165_s3 + $0x148] ss:$16 sps:$4 sm:$0xff]  }
 0x19b   : > { %1439 = vmatmul.mubr.bf16.vlgmr.msra.gmra.mxu0 %v2848_v33  ;;  %1480 = vmatmul.mubr.bf16.vlgmr.msra.gmra.mxu1 %v2840_v25  ;;  %v2437_v34 = vld [vmem:[%s3165_s3 + $0x328] ss:$16 sps:$4 sm:$0xff]   ;;  %v2442_v35 = vld [vmem:[%s3165_s3 + $0x10c] ss:$16 sps:$4 sm:$0xff]  }
 0x19c   : > { %1489 = vmatpush1.bf16.msra.mxu0 %v2350_v31  ;;  %1530 = vmatpush1.bf16.msra.mxu1 %v2353_v32  ;;  %v2439_v31 = vld [vmem:[%s3165_s3 + $0x32c] ss:$16 sps:$4 sm:$0xff]   ;;  %v2434_v32 = vld [vmem:[%s3165_s3 + $0x128] ss:$16 sps:$4 sm:$0xff]  }
 0x19d   : > { %1520 = vmatprep.mubr.bf16.mxu0 %v613_v29  ;;  %1561 = vmatprep.mubr.bf16.mxu1 %v615_v30  ;;  %v2431_v29 = vld [vmem:[%s3165_s3 + $0x348] ss:$16 sps:$4 sm:$0xff]   ;;  %v2436_v30 = vld [vmem:[%s3165_s3 + $0x12c] ss:$16 sps:$4 sm:$0xff]  }
 0x19e   : > { %1490 = vmatprep.subr.bf16.mxu0 %v2358_v36  ;;  %1531 = vmatprep.subr.bf16.mxu1 %v2361_v37  ;;  %v2445_v36 = vld [vmem:[%s3165_s3 + $0x30c] ss:$16 sps:$4 sm:$0xff]   ;;  %v2440_v37 = vld [vmem:[%s3165_s3 + $0x108] ss:$16 sps:$4 sm:$0xff]  }
 0x1a0   : > { %1491 = vmatpush1.bf16.msra.mxu0 %v2356_v38  ;;  %1532 = vmatpush1.bf16.msra.mxu1 %v2359_v39  ;;  %v2443_v38 = vld [vmem:[%s3165_s3 + $0x308] ss:$16 sps:$4 sm:$0xff]  }
 0x1a1   : > { %1492 = vmatprep.subr.bf16.mxu0 %v2364_v40  ;;  %1533 = vmatprep.subr.bf16.mxu1 %v2367_v41  ;;  %v2446_v39 = vld [vmem:[%s3167_s5 + $0x78] sm:$0xff]   ;;  %v2448_v41 = vld [vmem:[%s3167_s5 + $0x70] sm:$0xff]  }
 0x1a2   : > { %v2447_v40 = vld [vmem:[%s3167_s5 + $0x38] sm:$0xff]  }
 0x1a4   : > { %1493 = vmatpush1.bf16.msra.mxu0 %v2362_v42  ;;  %1534 = vmatpush1.bf16.msra.mxu1 %v2365_v43  ;;  %v2449_v42 = vld [vmem:[%s3167_s5 + $0x30] sm:$0xff]   ;;  %v2450_v43 = vld [vmem:[%s3167_s5 + $0x68] sm:$0xff]  }
 0x1a5   : > { %1494 = vmatprep.subr.bf16.mxu0 %v2370_v44  ;;  %1535 = vmatprep.subr.bf16.mxu1 %v2373_v45  ;;  %v2451_v44 = vld [vmem:[%s3167_s5 + $0x28] sm:$0xff]   ;;  %v2454_v45 = vld [vmem:[%s3167_s5 + $0x58] sm:$0xff]  }
 0x1a8   : > { %1495 = vmatpush1.bf16.msra.mxu0 %v2368_v46  ;;  %1536 = vmatpush1.bf16.msra.mxu1 %v2371_v47  ;;  %v2462_v46 = vld [vmem:[%s3167_s5 + $0xf8] sm:$0xff]  }
 0x1a9   : > { %1496 = vmatprep.subr.bf16.mxu0 %v2376_v48  ;;  %1537 = vmatprep.subr.bf16.mxu1 %v2379_v49  ;;  %v2463_v47 = vld [vmem:[%s3167_s5 + $0xb8] sm:$0xff]   ;;  %v2464_v48 = vld [vmem:[%s3167_s5 + $0xf0] sm:$0xff]  }
 0x1aa   : > { %v2455_v49 = vld [vmem:[%s3167_s5 + $0x18] sm:$0xff]  }
 0x1ac   : > { %1497 = vmatpush1.bf16.msra.mxu0 %v2374_v50  ;;  %1538 = vmatpush1.bf16.msra.mxu1 %v2377_v51  ;;  %v2456_v50 = vld [vmem:[%s3167_s5 + $0x50] sm:$0xff]  }
 0x1ad   : > { %1498 = vmatprep.subr.bf16.mxu0 %v2382_v52  ;;  %1539 = vmatprep.subr.bf16.mxu1 %v2385_v53  ;;  %v2465_v51 = vld [vmem:[%s3167_s5 + $0xb0] sm:$0xff]   ;;  %v2466_v52 = vld [vmem:[%s3167_s5 + $0xe8] sm:$0xff]  }
 0x1ae   : > { %v2457_v53 = vld [vmem:[%s3167_s5 + $0x10] sm:$0xff]  }
 0x1b0   : > { %1499 = vmatpush1.bf16.msra.mxu0 %v2380_v54  ;;  %1540 = vmatpush1.bf16.msra.mxu1 %v2383_v55  ;;  %v2458_v54 = vld [vmem:[%s3167_s5 + $0x48] sm:$0xff]  }
 0x1b1   : > { %1500 = vmatprep.subr.bf16.mxu0 %v2388_v56  ;;  %1541 = vmatprep.subr.bf16.mxu1 %v2391_v57  ;;  %v2467_v55 = vld [vmem:[%s3167_s5 + $0xa8] sm:$0xff]   ;;  %v2468_v56 = vld [vmem:[%s3167_s5 + $0xe0] sm:$0xff]  }
 0x1b2   : > { %v2459_v57 = vld [vmem:[%s3167_s5 + $0x8] sm:$0xff]  }
 0x1b4   : > { %1501 = vmatpush1.bf16.msra.mxu0 %v2386_v58  ;;  %1542 = vmatpush1.bf16.msra.mxu1 %v2389_v59  ;;  %v2460_v58 = vld [vmem:[%s3167_s5 + $0x40] sm:$0xff]  }
 0x1b5   : > { %1502 = vmatprep.subr.bf16.mxu0 %v2394_v60  ;;  %1543 = vmatprep.subr.bf16.mxu1 %v2397_v61  ;;  %v2469_v59 = vld [vmem:[%s3167_s5 + $0xa0] sm:$0xff]   ;;  %v2470_v60 = vld [vmem:[%s3167_s5 + $0xd8] sm:$0xff]  }
 0x1b6   : > { %v2461_v61 = vld [vmem:[%s3167_s5] sm:$0xff]  }
 0x1b8   : > { %1503 = vmatpush1.bf16.msra.mxu0 %v2392_v62  ;;  %1544 = vmatpush1.bf16.msra.mxu1 %v2395_v63  ;;  %v2471_v62 = vld [vmem:[%s3167_s5 + $0x98] sm:$0xff]   ;;  %v2472_v63 = vld [vmem:[%s3167_s5 + $0xd0] sm:$0xff]  }
 0x1b9   : > { %1504 = vmatprep.subr.bf16.mxu0 %v2400_v0  ;;  %1545 = vmatprep.subr.bf16.mxu1 %v2403_v1  ;;  %v2473_v0 = vld [vmem:[%s3167_s5 + $0x90] sm:$0xff]   ;;  %v2474_v1 = vld [vmem:[%s3167_s5 + $0xc8] sm:$0xff]  }
 0x1bc   : > { %1505 = vmatpush2.bf16.msra.mxu0 %v2398_v2  ;;  %1546 = vmatpush2.bf16.msra.mxu1 %v2401_v3  ;;  %v2475_v2 = vld [vmem:[%s3167_s5 + $0x88] sm:$0xff]   ;;  %v2476_v3 = vld [vmem:[%s3167_s5 + $0xc0] sm:$0xff]  }
 0x1bd   : > { %1506 = vmatprep.subr.bf16.mxu0 %v2406_v4  ;;  %1547 = vmatprep.subr.bf16.mxu1 %v2409_v5  ;;  %v2477_v4 = vld [vmem:[%s3167_s5 + $0x80] sm:$0xff]  }
 0x1be   : > { %v744_v5 = vld [vmem:[%s3166_s4] sm:$0xf] }
 0x1c0   : > { %1507 = vmatpush2.bf16.msra.mxu0 %v2404_v6  ;;  %1548 = vmatpush2.bf16.msra.mxu1 %v2407_v7  ;;  %v749_v6 = vrot.slane %v744_v5, %v478_v9  ;;  %v753_v7 = vrot.slane %v744_v5, %v482_v11  ;;  %v757_v9 = vrot.slane %v744_v5, %v486_v8 }
 0x1c1   : > { %1508 = vmatprep.subr.bf16.mxu0 %v2412_v10  ;;  %1549 = vmatprep.subr.bf16.mxu1 %v2415_v13  ;;  %v761_v11 = vrot.slane %v744_v5, %v490_v12 }
 0x1c4   : > { %1509 = vmatpush2.bf16.msra.mxu0 %v2410_v14  ;;  %1550 = vmatpush2.bf16.msra.mxu1 %v2413_v15 }
 0x1c5   : > { %1510 = vmatprep.subr.bf16.mxu0 %v2418_v16  ;;  %1551 = vmatprep.subr.bf16.mxu1 %v2421_v17 }
 0x1c8   : > { %1511 = vmatpush2.bf16.msra.mxu0 %v2416_v18  ;;  %1552 = vmatpush2.bf16.msra.mxu1 %v2419_v19 }
 0x1c9   : > { %1512 = vmatprep.subr.bf16.mxu0 %v2424_v20  ;;  %1553 = vmatprep.subr.bf16.mxu1 %v2427_v21 }
 0x1cc   : > { %1513 = vmatpush2.bf16.msra.mxu0 %v2422_v22  ;;  %1554 = vmatpush2.bf16.msra.mxu1 %v2425_v23 }
 0x1cd   : > { %1514 = vmatprep.subr.bf16.mxu0 %v2430_v24  ;;  %1555 = vmatprep.subr.bf16.mxu1 %v2433_v26 }
 0x1d0   : > { %1515 = vmatpush2.bf16.msra.mxu0 %v2428_v28  ;;  %1556 = vmatpush2.bf16.msra.mxu1 %v2431_v29 }
 0x1d1   : > { %1516 = vmatprep.subr.bf16.mxu0 %v2436_v30  ;;  %1557 = vmatprep.subr.bf16.mxu1 %v2439_v31 }
 0x1d4   : > { %1517 = vmatpush2.bf16.msra.mxu0 %v2434_v32  ;;  %1558 = vmatpush2.bf16.msra.mxu1 %v2437_v34 }
 0x1d5   : > { %1518 = vmatprep.subr.bf16.mxu0 %v2442_v35  ;;  %1559 = vmatprep.subr.bf16.mxu1 %v2445_v36 }
 0x1d8   : > { %1519 = vmatpush2.bf16.msra.mxu0 %v2440_v37  ;;  %1560 = vmatpush2.bf16.msra.mxu1 %v2443_v38 }
 0x1d9   : > { %2166 = vmatprep.subr.bf16.mxu0 %v2446_v39  ;;  %2188 = vmatprep.subr.bf16.mxu1 %v2462_v46 }
 0x1db   : > { %1521 = vmatmul.mubr.bf16.vlgmr.msra.gmra.mxu0 %v2848_v33  ;;  %1562 = vmatmul.mubr.bf16.vlgmr.msra.gmra.mxu1 %v2840_v25  ;;  %v2452_v25 = vld [vmem:[%s3167_s5 + $0x60] sm:$0xff]  }
 0x1dc   : > { %2167 = vmatpush3.bf16.msra.mxu0 %v2447_v40  ;;  %v2453_v33 = vld [vmem:[%s3167_s5 + $0x20] sm:$0xff]   ;;  %2189 = vmatpush3.bf16.msra.mxu1 %v2463_v47 }
 0x1dd   : > { %2168 = vmatprep.subr.bf16.mxu0 %v2448_v41  ;;  %2190 = vmatprep.subr.bf16.mxu1 %v2464_v48  ;;  %v2130_v47 = vld [vmem:[%s3168_s6] ss:$0 sm:$0xff] }
 0x1e0   : > { %2169 = vmatpush3.bf16.msra.mxu0 %v2449_v42  ;;  %2191 = vmatpush3.bf16.msra.mxu1 %v2465_v51 }
 0x1e1   : > { %2170 = vmatprep.subr.bf16.mxu0 %v2450_v43  ;;  %2192 = vmatprep.subr.bf16.mxu1 %v2466_v52 }
 0x1e4   : > { %2171 = vmatpush3.bf16.msra.mxu0 %v2451_v44  ;;  %2193 = vmatpush3.bf16.msra.mxu1 %v2467_v55 }
 0x1e5   : > { %2172 = vmatprep.subr.bf16.mxu0 %v2452_v25  ;;  %2194 = vmatprep.subr.bf16.mxu1 %v2468_v56 }
 0x1e8   : > { %2173 = vmatpush3.bf16.msra.mxu0 %v2453_v33  ;;  %2195 = vmatpush3.bf16.msra.mxu1 %v2469_v59 }
 0x1e9   : > { %2174 = vmatprep.subr.bf16.mxu0 %v2454_v45  ;;  %2196 = vmatprep.subr.bf16.mxu1 %v2470_v60 }
 0x1ec   : > { %2175 = vmatpush3.bf16.msra.mxu0 %v2455_v49  ;;  %2197 = vmatpush3.bf16.msra.mxu1 %v2471_v62 }
 0x1ed   : > { %2176 = vmatprep.subr.bf16.mxu0 %v2456_v50  ;;  %2198 = vmatprep.subr.bf16.mxu1 %v2472_v63 }
 0x1f0   : > { %2177 = vmatpush3.bf16.msra.mxu0 %v2457_v53  ;;  %2199 = vmatpush3.bf16.msra.mxu1 %v2473_v0 }
 0x1f1   : > { %2178 = vmatprep.subr.bf16.mxu0 %v2458_v54  ;;  %2200 = vmatprep.subr.bf16.mxu1 %v2474_v1 }
 0x1f4   : > { %2179 = vmatpush3.bf16.msra.mxu0 %v2459_v57  ;;  %2201 = vmatpush3.bf16.msra.mxu1 %v2475_v2 }
 0x1f5   : > { %2180 = vmatprep.subr.bf16.mxu0 %v2460_v58  ;;  %2202 = vmatprep.subr.bf16.mxu1 %v2476_v3 }
 0x1f8   : > { %2181 = vmatpush3.bf16.msra.mxu0 %v2461_v61  ;;  %2203 = vmatpush3.bf16.msra.mxu1 %v2477_v4 }
 0x25b   : > { %v1440_v10 = vpop.f32.mrf.mxu0  ;;  %v1481_v13 = vpop.f32.mrf.mxu1 }
 0x25c   : > { %v1441_v14 = vadd.f32 %v1440_v10, %v749_v6 }
 0x25d   : > { %v1442_v15 = vpop.f32.mrf.mxu0  ;;  %v1483_v16 = vpop.f32.mrf.mxu1 }
 0x25e   : > { %v1482_v17 = vadd.f32 %v1481_v13, %v1441_v14  ;;  %v1443_v18 = vadd.f32 %v1442_v15, %v753_v7 }
 0x25f   : > { %v1444_v19 = vpop.f32.mrf.mxu0  ;;  %v1485_v20 = vpop.f32.mrf.mxu1 }
 0x260   : > { %v1484_v21 = vadd.f32 %v1483_v16, %v1443_v18  ;;  %v1570_v22 = vmax.f32 %v1482_v17, 0.0 }
 0x261   : > { %v1445_v23 = vpop.f32.mrf.mxu0  ;;  %v1486_v24 = vpop.f32.mrf.mxu1 }
 0x262   : > { %v1571_v26 = vmax.f32 %v1484_v21, 0.0  ;;  %v1574_v29 = vpack.c.bf16 %v1570_v22, %v1570_v22 }
 0x264   : > { %v1575_v28 = vpack.c.bf16 %v1571_v26, %v1571_v26 }
 0x266   : > { %1873 = vmatprep.mubr.bf16.mxu0 %v1575_v28 }
 0x267   : > { %1874 = vmatmul.mubr.bf16.vlgmr.msra.gmra.mxu0 %v1574_v29 }
 0x29b   : > { %v1522_v30 = vpop.f32.mrf.mxu0  ;;  %v1563_v31 = vpop.f32.mrf.mxu1 }
 0x29c   : > { %v1523_v32 = vadd.f32 %v1522_v30, %v757_v9 }
 0x29d   : > { %v1524_v34 = vpop.f32.mrf.mxu0  ;;  %v1565_v35 = vpop.f32.mrf.mxu1 }
 0x29e   : > { %v1564_v36 = vadd.f32 %v1563_v31, %v1523_v32  ;;  %v1525_v37 = vadd.f32 %v1524_v34, %v761_v11 }
 0x29f   : > { %v1526_v38 = vpop.f32.mrf.mxu0  ;;  %v1567_v39 = vpop.f32.mrf.mxu1 }
 0x2a0   : > { %v1566_v40 = vadd.f32 %v1565_v35, %v1525_v37  ;;  %v1572_v41 = vmax.f32 %v1564_v36, 0.0 }
 0x2a1   : > { %v1527_v42 = vpop.f32.mrf.mxu0  ;;  %v1568_v43 = vpop.f32.mrf.mxu1 }
 0x2a2   : > { %v1573_v44 = vmax.f32 %v1566_v40, 0.0  ;;  %v1576_v33 = vpack.c.bf16 %v1572_v41, %v1572_v41 }
 0x2a4   : > { %v1577_v25 = vpack.c.bf16 %v1573_v44, %v1573_v44 }
 0x2a6   : > { %1913 = vmatprep.mubr.bf16.mxu1 %v1577_v25 }
 0x2a7   : > { %1914 = vmatmul.mubr.bf16.vlgmr.msra.gmra.mxu1 %v1576_v33 }
 0x327   : > { %v2182_v27 = vpop.f32.mrf.mxu0 }
 0x329   : > { %v2183_v8 = vpop.f32.mrf.mxu0 }
 0x32a   : > { %v2184_v46 = vadd.f32 %v2183_v8, %v2182_v27 }
 0x32b   : > { %v2185_v12 = vpop.f32.mrf.mxu0 }
 0x32c   : > { %v1876_v50 = vadd.f32 %v2184_v46, %v2130_v47 }
 0x32d   : > { %v2186_v45 = vpop.f32.mrf.mxu0 }
 0x367   : > { %v2204_v48 = vpop.f32.mrf.mxu1 }
 0x369   : > { %v2205_v49 = vpop.f32.mrf.mxu1 }
 0x36a   : > { %v2206_v51 = vadd.f32 %v2205_v49, %v2204_v48 }
 0x36b   : > { %v2207_v52 = vpop.f32.mrf.mxu1 }
 0x36c   : > { %v1916_v53 = vadd.f32 %v2206_v51, %v1876_v50 }
 0x36d   : > { %v2208_v54 = vpop.f32.mrf.mxu1 }
 0x36e   : > { %1921 = vst [vmem:[%s3169_s7] sm:$0xff] %v1916_v53 }
 0x36f PF: > { %s17_s28 = sadd.s32 1, %s2516_s28   ;;  %s3170_s24 = smov %s2504_s25 }
 0x370   : > { %p14_p11 = scmp.ge.s32.totalorder %s17_s28, 4   ;;  %s3171_s25 = smov %s2596_s9 }
 0x371   : > { %s3172_s26 = smov %s2512_s27  ;;  %s3173_s27 = smov %s3175_s29 }
 0x372   :  { %16 = sbr.rel (!%p14_p11) target bundleno = 3 (0x3), region = 132 }

</bundles_post_ra>
